<compile_context>
chip_gen: v6e
topology: v6e:2x2x1
jax: 0.10.0
libtpu: 0.0.40
codegen_flags: <defaults>
</compile_context>

<pallas_src>
import math

import jax
import jax.numpy as jnp
from jax.experimental import pallas as pl
from jax.experimental.pallas import tpu as pltpu


def _round_up(n, m):
    return ((n + m - 1) // m) * m


def critic_forward(x, u, params, tile_b=1024):
    w1, b1, w2, b2, w3, b3 = params
    B, S = x.shape
    A = u.shape[1]
    H1 = w1.shape[1]                    # 400 (derived, not hard-coded)
    H2 = w2.shape[1]                    # 300
    H1P = _round_up(H1 + A + 1, 128)    # 512: room for u lanes + constant-1 lane
    H2P = _round_up(H2, 128)            # 384
    K1 = S + 1 + A                      # [x | 1 | u]
    bf = jnp.bfloat16

    # ---- layer-1 extended weight: [x | 1 | u] @ w1_ext = [xW1+b1 | u | 1 | 0] ----
    w1_ext = jnp.zeros((K1, H1P), jnp.float32)
    w1_ext = w1_ext.at[:S, :H1].set(w1)                                  # W1
    w1_ext = w1_ext.at[S, :H1].set(b1)                                   # b1 (ones col)
    w1_ext = w1_ext.at[S, H1 + A].set(1.0)                               # constant-1 lane
    w1_ext = w1_ext.at[S + 1:, H1:H1 + A].set(jnp.eye(A, dtype=jnp.float32))  # route u
    w1_ext = w1_ext.astype(bf)

    # ---- layer-2 merged weight: rows [W2_h1 | W2_u | b2 | 0...] ----
    w2m = jnp.zeros((H1P, H2P), jnp.float32)
    w2m = w2m.at[:H1, :H2].set(w2[:H1])
    w2m = w2m.at[H1:H1 + A, :H2].set(w2[H1:])
    w2m = w2m.at[H1 + A, :H2].set(b2)
    w2m = w2m.astype(bf)

    # ---- layer-3: lane-padded row vector + SMEM scalar bias ----
    w3row = jnp.zeros((1, H2P), jnp.float32).at[0, :H2].set(w3[:, 0])
    b3s = jnp.asarray(b3, jnp.float32).reshape(1, 1)

    # ---- streamed activations: one bf16 array [x | 1 | u] ----
    xu = jnp.concatenate([x, jnp.ones((B, 1), x.dtype), u], axis=1).astype(bf)

    # ---- batch tiling: 16-row aligned, single tile for small B, >=2 tiles on
    #      large B so v7x's two TensorCores both get work ----
    tile_b = max(16, min(_round_up(tile_b, 16), _round_up(B, 16)))
    if B >= 512:
        tile_b = min(tile_b, _round_up((B + 1) // 2, 16))
    Bp = _round_up(B, tile_b)
    xu = jnp.pad(xu, ((0, Bp - B), (0, 0)))
    grid = (Bp // tile_b,)

    def kernel(xu_ref, w1_ref, w2_ref, w3_ref, b3_ref, out_ref):
        # layer 1 (+ u / constant-1 routing).  K=21 -> one MXU K pass.
        pre1 = jnp.dot(xu_ref[...], w1_ref[...],
                       preferred_element_type=jnp.float32)        # [TB, H1P] f32
        lane = jax.lax.broadcasted_iota(jnp.int32, pre1.shape, 1)
        # ReLU only on the real hidden lanes; u / 1 / zero-pad lanes pass through.
        h1 = jnp.where(lane < H1, jnp.maximum(pre1, 0.0), pre1)

        # layer 2: single matmul against the merged weight (b2 via the 1-lane).
        h2 = jnp.dot(h1.astype(jnp.bfloat16), w2_ref[...],
                     preferred_element_type=jnp.float32)          # [TB, H2P] f32
        h2 = jnp.maximum(h2, 0.0)

        # layer 3 (out_features=1): VPU multiply + XLU lane reduction.
        q = jnp.sum(h2 * w3_ref[...], axis=-1, keepdims=True) + b3_ref[0, 0]
        out_ref[...] = q.astype(out_ref.dtype)

    in_specs = [
        # streamed activations (per-tile blocks, double-buffered by the pipeline)
        pl.BlockSpec((tile_b, K1), lambda i: (i, 0)),
        # weights: constant index_map -> resident in VMEM across grid steps
        pl.BlockSpec((K1, H1P), lambda i: (0, 0)),
        pl.BlockSpec((H1P, H2P), lambda i: (0, 0)),
        pl.BlockSpec((1, H2P), lambda i: (0, 0)),
        pl.BlockSpec((1, 1), lambda i: (0, 0),
                     memory_space=pltpu.MemorySpace.SMEM),
    ]
    out_specs = pl.BlockSpec((tile_b, 1), lambda i: (i, 0))

    flops = 2 * Bp * (K1 * H1P + H1P * H2P + H2P)
    bytes_accessed = int(xu.size * 2 + Bp * 4
                         + w1_ext.size * 2 + w2m.size * 2
                         + w3row.size * 4 + 4)

    out = pl.pallas_call(
        kernel,
        out_shape=jax.ShapeDtypeStruct((Bp, 1), jnp.float32),
        grid=grid,
        in_specs=in_specs,
        out_specs=out_specs,
        compiler_params=pltpu.CompilerParams(
            dimension_semantics=("parallel",),
            vmem_limit_bytes=48 * 1024 * 1024),
        cost_estimate=pl.CostEstimate(flops=flops, transcendentals=0,
                                      bytes_accessed=bytes_accessed),
    )(xu, w1_ext, w2m, w3row, b3s)

    return out[:B]


def init_params(key, state_dim, action_dim):
    """Deterministic init mimicking nn.Linear's U(-1/sqrt(fan_in), 1/sqrt(fan_in))."""
    def linear(k, fan_in, fan_out):
        kw, kb = jax.random.split(k)
        bound = 1.0 / math.sqrt(fan_in)
        w = jax.random.uniform(kw, (fan_in, fan_out), jnp.float32, -bound, bound)
        b = jax.random.uniform(kb, (fan_out,), jnp.float32, -bound, bound)
        return w, b

    k1, k2, k3 = jax.random.split(key, 3)
    w1, b1 = linear(k1, state_dim, 400)
    w2, b2 = linear(k2, 400 + action_dim, 300)
    w3, b3 = linear(k3, 300, 1)
    return (w1, b1, w2, b2, w3, b3)


def critic_reference(x, u, params):
    """Plain-JAX reference using the kernel's bf16-operand / f32-accumulate scheme."""
    w1, b1, w2, b2, w3, b3 = params
    bf, f32 = jnp.bfloat16, jnp.float32
    h1 = jax.nn.relu(
        jnp.dot(x.astype(bf), w1.astype(bf), preferred_element_type=f32)
        + b1.astype(bf).astype(f32))
    cat = jnp.concatenate([h1.astype(bf), u.astype(bf)], axis=1)
    h2 = jax.nn.relu(
        jnp.dot(cat, w2.astype(bf), preferred_element_type=f32)
        + b2.astype(bf).astype(f32))
    return jnp.sum(h2 * w3[:, 0], axis=-1, keepdims=True) + b3


if __name__ == "__main__":
    B, state_dim, action_dim = 2, 16, 4

    key = jax.random.PRNGKey(0)
    kx, ku, kp = jax.random.split(key, 3)
    x = jax.random.normal(kx, (B, state_dim), jnp.float32)
    u = jax.random.normal(ku, (B, action_dim), jnp.float32)
    params = init_params(kp, state_dim, action_dim)

    out = critic_forward(x, u, params)
    out = jax.block_until_ready(out)

    ref = critic_reference(x, u, params)
    assert out.shape == (B, 1)
    assert jnp.allclose(out, ref, atol=2e-2, rtol=2e-2), (out, ref)

    print("KERNEL_OK")
</pallas_src>

<mosaic_0001>
module attributes {stable_mosaic.version = 11 : i64} {
  func.func @kernel(%arg0: i32, %arg1: memref<16x21xbf16, #tpu.memory_space<vmem>>, %arg2: memref<21x512xbf16, #tpu.memory_space<vmem>>, %arg3: memref<512x384xbf16, #tpu.memory_space<vmem>>, %arg4: memref<1x384xf32, #tpu.memory_space<vmem>>, %arg5: memref<1x1xf32, #tpu.memory_space<smem>>, %arg6: memref<16x1xf32, #tpu.memory_space<vmem>>) attributes {dimension_semantics = [#tpu.dimension_semantics<parallel>], iteration_bounds = array<i64: 1>, scalar_prefetch = 0 : i64, scratch_operands = 0 : i64, tpu.core_type = #tpu.core_type<tc>, window_params = [{transform_indices = @transform_0, window_bounds = array<i64: 16, 21>}, {pipeline_mode = #tpu.pipeline_mode<synchronous>, transform_indices = @transform_1, window_bounds = array<i64: 21, 512>}, {pipeline_mode = #tpu.pipeline_mode<synchronous>, transform_indices = @transform_2, window_bounds = array<i64: 512, 384>}, {pipeline_mode = #tpu.pipeline_mode<synchronous>, transform_indices = @transform_3, window_bounds = array<i64: 1, 384>}, {transform_indices = @transform_4, window_bounds = array<i64: 1, 1>}, {transform_indices = @transform_5, window_bounds = array<i64: 16, 1>}]} {
    %c0 = arith.constant 0 : index
    %c0_0 = arith.constant 0 : index
    %0 = vector.load %arg1[%c0, %c0_0] : memref<16x21xbf16, #tpu.memory_space<vmem>>, vector<16x21xbf16>
    %c0_1 = arith.constant 0 : index
    %c0_2 = arith.constant 0 : index
    %1 = vector.load %arg2[%c0_1, %c0_2] : memref<21x512xbf16, #tpu.memory_space<vmem>>, vector<21x512xbf16>
    %cst = arith.constant dense<0.000000e+00> : vector<16x512xf32>
    %2 = tpu.matmul %0, %1, %cst {dimension_numbers = #tpu.dot_dimension_numbers<[1], [0], [0], [1], [0, 0, 1, 1], [], []>} : vector<16x21xbf16>, vector<21x512xbf16>, vector<16x512xf32> -> vector<16x512xf32>
    %3 = tpu.iota {dimensions = array<i32: 1>} : vector<16x512xi32>
    %c400_i32 = arith.constant 400 : i32
    %4 = vector.broadcast %c400_i32 : i32 to vector<16x512xi32>
    %5 = arith.cmpi slt, %3, %4 : vector<16x512xi32>
    %cst_3 = arith.constant 0.000000e+00 : f32
    %6 = vector.broadcast %cst_3 : f32 to vector<16x512xf32>
    %7 = arith.maximumf %2, %6 : vector<16x512xf32>
    %8 = arith.select %5, %7, %2 : vector<16x512xi1>, vector<16x512xf32>
    %9 = arith.truncf %8 : vector<16x512xf32> to vector<16x512xbf16>
    %c0_4 = arith.constant 0 : index
    %c0_5 = arith.constant 0 : index
    %10 = vector.load %arg3[%c0_4, %c0_5] : memref<512x384xbf16, #tpu.memory_space<vmem>>, vector<512x384xbf16>
    %cst_6 = arith.constant dense<0.000000e+00> : vector<16x384xf32>
    %11 = tpu.matmul %9, %10, %cst_6 {dimension_numbers = #tpu.dot_dimension_numbers<[1], [0], [0], [1], [0, 0, 1, 1], [], []>} : vector<16x512xbf16>, vector<512x384xbf16>, vector<16x384xf32> -> vector<16x384xf32>
    %cst_7 = arith.constant 0.000000e+00 : f32
    %12 = vector.broadcast %cst_7 : f32 to vector<16x384xf32>
    %13 = arith.maximumf %11, %12 : vector<16x384xf32>
    %c0_8 = arith.constant 0 : index
    %c0_9 = arith.constant 0 : index
    %14 = vector.load %arg4[%c0_8, %c0_9] : memref<1x384xf32, #tpu.memory_space<vmem>>, vector<1x384xf32>
    %15 = vector.broadcast %14 : vector<1x384xf32> to vector<16x384xf32>
    %16 = arith.mulf %13, %15 : vector<16x384xf32>
    %cst_10 = arith.constant dense<0.000000e+00> : vector<16xf32>
    %17 = vector.multi_reduction <add>, %16, %cst_10 [1] : vector<16x384xf32> to vector<16xf32>
    %18 = vector.shape_cast %17 : vector<16xf32> to vector<16x1xf32>
    %c0_11 = arith.constant 0 : index
    %c0_12 = arith.constant 0 : index
    %19 = memref.load %arg5[%c0_11, %c0_12] : memref<1x1xf32, #tpu.memory_space<smem>>
    %20 = vector.broadcast %19 : f32 to vector<16x1xf32>
    %21 = arith.addf %18, %20 : vector<16x1xf32>
    %c0_13 = arith.constant 0 : index
    %c0_14 = arith.constant 0 : index
    %22 = vector.load %arg6[%c0_13, %c0_14] : memref<16x1xf32, #tpu.memory_space<vmem>>, vector<16x1xf32>
    tpu.vector_store %arg6[%c0_13, %c0_14], %21 {strides = array<i32>} : memref<16x1xf32, #tpu.memory_space<vmem>>, vector<16x1xf32>,
    return
  }
  func.func @transform_0(%arg0: i32) -> (i32, i32) {
    %c0_i32 = arith.constant 0 : i32
    %c0_i32_0 = arith.constant 0 : i32
    return %arg0, %c0_i32 : i32, i32
  }
  func.func @transform_1(%arg0: i32) -> (i32, i32) {
    %c0_i32 = arith.constant 0 : i32
    %c0_i32_0 = arith.constant 0 : i32
    %c0_i32_1 = arith.constant 0 : i32
    return %c0_i32, %c0_i32_0 : i32, i32
  }
  func.func @transform_2(%arg0: i32) -> (i32, i32) {
    %c0_i32 = arith.constant 0 : i32
    %c0_i32_0 = arith.constant 0 : i32
    %c0_i32_1 = arith.constant 0 : i32
    return %c0_i32, %c0_i32_0 : i32, i32
  }
  func.func @transform_3(%arg0: i32) -> (i32, i32) {
    %c0_i32 = arith.constant 0 : i32
    %c0_i32_0 = arith.constant 0 : i32
    %c0_i32_1 = arith.constant 0 : i32
    return %c0_i32, %c0_i32_0 : i32, i32
  }
  func.func @transform_4(%arg0: i32) -> (i32, i32) {
    %c0_i32 = arith.constant 0 : i32
    %c0_i32_0 = arith.constant 0 : i32
    %c0_i32_1 = arith.constant 0 : i32
    return %c0_i32, %c0_i32_0 : i32, i32
  }
  func.func @transform_5(%arg0: i32) -> (i32, i32) {
    %c0_i32 = arith.constant 0 : i32
    %c0_i32_0 = arith.constant 0 : i32
    return %arg0, %c0_i32 : i32, i32
  }
}

</mosaic_0001>

<bundles_post_ra>
// kernel: tpu_custom_call.1
= control target key start
LH: loop header
LB: loop body
LE: loop exit
PB: predicated region body
PF: predicated region fallthrough
CT: control target
= control target key end

     0   :  { %11 = vsyncpa [#allocation4], 0  ;;  %s1536_s0 = inlined_call_operand.hbm [shape: bf16[16,21], index: 0, kind: input, shape index: {}]   ;;  %s1537_s1 = inlined_call_operand.hbm [shape: bf16[21,512], index: 1, kind: input, shape index: {}]   ;;  %s1538_s2 = inlined_call_operand.hbm [shape: bf16[512,384], index: 2, kind: input, shape index: {}]   ;;  %s1539_s3 = inlined_call_operand.vmem [shape: f32[1,384], index: 3, kind: input, shape index: {}]   ;;  %s1540_s4 = inlined_call_operand.<no memory space> [shape: f32[1,1], index: 4, kind: input, shape index: {}]   ;;  %s1541_s5 = inlined_call_operand.vmem [shape: f32[16,1], index: 5, kind: output, shape index: {}]  }
   0x1   :  { %12 = vsyncpa [#allocation6], 0  ;;  %s1464_s18 = smov [#allocation5]  }
   0x2   :  { %s30_s19 = sshll.u32 %s1464_s18, 4  ;;  %s31_s19 = int_to_ptr.vmem [resolvable:$true] %s30_s19 }
   0x3   :  { %s1408_s20 = scalar_lea.vmem %s31_s19, 768  ;;  %p1413_p1 = scmp.lt.s32.totalorder %s31_s19, %s31_s19 }
   0x4   :  { %p1409_p0 = scmp.ne.s32.totalorder %s31_s19, %s1408_s20  ;;  %p1414_p2 = scmp.lt.s32.totalorder %s1408_s20, %s1408_s20 }
   0x6   :  { %p1415_p3 = por %p1414_p2, %p1413_p1 }
   0x8   :  { %p1416_p4 = pnand %p1415_p3, %p1409_p0 }
   0xa   :  { %1419 = shalt.err (!%p1416_p4)
}
   0xb   :  { %s1465_s21 = smov 256   ;;  %s1466_s22 = smov 16  }
   0xc   :  { %36 = dma.hbm_to_vmem [thread:$0]  %s1537_s1, 768, %s31_s19, [#allocation6], %s1465_s21, %s1465_s21, %s1466_s22  }
   0xd   :  { %s1467_s25 = smov [#allocation3]  }
   0xe   :  { %s18_s26 = sshll.u32 %s1467_s25, 4  ;;  %s19_s26 = int_to_ptr.vmem [resolvable:$true] %s18_s26 }
   0xf   :  { %s1428_s27 = scalar_lea.vmem %s19_s26, 128  ;;  %p1433_p6 = scmp.lt.s32.totalorder %s19_s26, %s19_s26 }
  0x10   :  { %p1429_p5 = scmp.ne.s32.totalorder %s19_s26, %s1428_s27  ;;  %p1434_p7 = scmp.lt.s32.totalorder %s1428_s27, %s1428_s27 }
  0x12   :  { %p1435_p8 = por %p1434_p7, %p1433_p6 }
  0x14   :  { %p1436_p9 = pnand %p1435_p8, %p1429_p5 }
  0x16   :  { %1439 = shalt.err (!%p1436_p9)
}
  0x17   :  { %s1468_s28 = smov 64   ;;  %s1469_s29 = smov 4  }
  0x18   :  { %24 = dma.hbm_to_vmem [thread:$0]  %s1536_s0, 128, %s19_s26, [#allocation4], %s1468_s28, %s1468_s28, %s1469_s29  }
  0x19   :  { %s1470_s7 = smov [#allocation7]  }
  0x1a   :  { %s42_s8 = sshll.u32 %s1470_s7, 4  ;;  %s43_s8 = int_to_ptr.vmem [resolvable:$true] %s42_s8 }
  0x1b   :  { %s1448_s1 = scalar_lea.vmem %s43_s8, 12288  ;;  %p1453_p11 = scmp.lt.s32.totalorder %s43_s8, %s43_s8 }
  0x1c   :  { %p1449_p10 = scmp.ne.s32.totalorder %s43_s8, %s1448_s1  ;;  %p1454_p12 = scmp.lt.s32.totalorder %s1448_s1, %s1448_s1 }
  0x1e   :  { %p1455_p13 = por %p1454_p12, %p1453_p11 }
  0x20   :  { %p1456_p0 = pnand %p1455_p13, %p1449_p10 }
  0x22   :  { %1459 = shalt.err (!%p1456_p0)
}
  0x23   :  { %s1471_s9 = smov 192   ;;  %s1472_s10 = smov 12  }
  0x24   :  { %48 = dma.hbm_to_vmem [thread:$0]  %s1538_s2, 12288, %s43_s8, [#allocation6], %s1471_s9, %s1471_s9, %s1472_s10  }
  0x25   :  { %1460 = dma.done.wait [#allocation4], 128  }
  0x26   :  { %1461 = vsyncadd [#allocation4], 4294967168 }
  0x27   :  { %1462 = dma.done.wait [#allocation6], 13056  }
  0x28   :  { %1463 = vsyncadd [#allocation6], 4294954240  ;;  %vm110_vm0 = vcmask 1041408   ;;  %v1473_v0 = vmov 0   ;;  %vm111_vm1 = vcmask 1042432   ;;  %v1474_v1 = vmov 65535  }
  0x29   :  { %158 = vmatprep.mubr.bf16.mxu0 %v1473_v0  ;;  %201 = vmatprep.mubr.bf16.mxu1 %v1473_v0  ;;  %v112_v2 = vsel %vm110_vm0, 4294967295, %v1474_v1  ;;  %v69_v3 = vld [vmem:[#allocation5 + $0x20] sm:$0x77]  ;;  %v70_v5 = vld [vmem:[#allocation5 + $0x28] sm:$0x77]  ;;  %v1271_v20 = vld [vmem:[#allocation3] sm:$0xff]  }
  0x2a   :  { %v113_v4 = vsel %vm111_vm1, %v112_v2, 0  ;;  %v1105_v6 = vcombine.high %v69_v3, %v69_v3  ;;  %v1107_v7 = vcombine.high %v70_v5, %v70_v5  ;;  %v1104_v8 = vcombine.low %v69_v3, %v69_v3  ;;  %v1265_v10 = vld [vmem:[#allocation5 + $0x4] ss:$16 sps:$4 sm:$0xff]   ;;  %v1267_v15 = vld [vmem:[#allocation5 + $0xc] ss:$16 sps:$4 sm:$0xff]  }
  0x2b   :  { %v1106_v9 = vcombine.low %v70_v5, %v70_v5  ;;  %v1269_v16 = vld [vmem:[#allocation5] ss:$16 sps:$4 sm:$0xff]   ;;  %v1270_v17 = vld [vmem:[#allocation5 + $0x8] ss:$16 sps:$4 sm:$0xff]   ;;  %vm106_vm2 = vcmask 171008   ;;  %vm1090_vm4 = vcmask 7168  }
  0x2c   :  { %v118_v11 = vand.u32 %v1105_v6, %v113_v4  ;;  %v124_v12 = vand.u32 %v1107_v7, %v113_v4  ;;  %v115_v13 = vand.u32 %v1104_v8, %v113_v4  ;;  %v1274_v18 = vld [vmem:[#allocation7 + $0xac] ss:$12 sps:$4 sm:$0xff]   ;;  %v1272_v21 = vld [vmem:[#allocation7 + $0xa8] ss:$12 sps:$4 sm:$0xff]   ;;  %v1278_v25 = vld [vmem:[#allocation7 + $0x90] ss:$12 sps:$4 sm:$0xff]  }
  0x2d   :  { %v121_v14 = vand.u32 %v1106_v9, %v113_v4  ;;  %v1277_v19 = vld [vmem:[#allocation7 + $0x22c] ss:$12 sps:$4 sm:$0xff]   ;;  %v1275_v22 = vld [vmem:[#allocation7 + $0x228] ss:$12 sps:$4 sm:$0xff]   ;;  %v1281_v26 = vld [vmem:[#allocation7 + $0x210] ss:$12 sps:$4 sm:$0xff]  }
  0x2e   :  { %138 = vmatprep.subr.bf16.mxu0 %v118_v11  ;;  %181 = vmatprep.subr.bf16.mxu1 %v124_v12  ;;  %v1280_v23 = vld [vmem:[#allocation7 + $0x94] ss:$12 sps:$4 sm:$0xff]   ;;  %v1286_v27 = vld [vmem:[#allocation7 + $0x7c] ss:$12 sps:$4 sm:$0xff]   ;;  %v1284_v29 = vld [vmem:[#allocation7 + $0x78] ss:$12 sps:$4 sm:$0xff]  }
  0x2f   :  { %139 = vmatpush1.bf16.msra.mxu0 %v115_v13  ;;  %182 = vmatpush1.bf16.msra.mxu1 %v121_v14  ;;  %v1283_v24 = vld [vmem:[#allocation7 + $0x214] ss:$12 sps:$4 sm:$0xff]   ;;  %v1289_v28 = vld [vmem:[#allocation7 + $0x1fc] ss:$12 sps:$4 sm:$0xff]   ;;  %v1287_v30 = vld [vmem:[#allocation7 + $0x1f8] ss:$12 sps:$4 sm:$0xff]  }
  0x30   :  { %140 = vmatprep.subr.bf16.mxu0 %v1265_v10  ;;  %183 = vmatprep.subr.bf16.mxu1 %v1267_v15  ;;  %v1292_v31 = vld [vmem:[#allocation7 + $0x64] ss:$12 sps:$4 sm:$0xff]   ;;  %v1290_v33 = vld [vmem:[#allocation7 + $0x60] ss:$12 sps:$4 sm:$0xff]   ;;  %v1296_v37 = vld [vmem:[#allocation7 + $0x48] ss:$12 sps:$4 sm:$0xff]  }
  0x31   :  { %v1295_v32 = vld [vmem:[#allocation7 + $0x1e4] ss:$12 sps:$4 sm:$0xff]   ;;  %v1293_v34 = vld [vmem:[#allocation7 + $0x1e0] ss:$12 sps:$4 sm:$0xff]   ;;  %v1299_v38 = vld [vmem:[#allocation7 + $0x1c8] ss:$12 sps:$4 sm:$0xff]  }
  0x32   :  { %v1298_v35 = vld [vmem:[#allocation7 + $0x4c] ss:$12 sps:$4 sm:$0xff]   ;;  %v1304_v39 = vld [vmem:[#allocation7 + $0x34] ss:$12 sps:$4 sm:$0xff]   ;;  %v1302_v41 = vld [vmem:[#allocation7 + $0x30] ss:$12 sps:$4 sm:$0xff]  }
  0x33   :  { %141 = vmatpush1.bf16.msra.mxu0 %v1269_v16  ;;  %184 = vmatpush1.bf16.msra.mxu1 %v1270_v17  ;;  %v1301_v36 = vld [vmem:[#allocation7 + $0x1cc] ss:$12 sps:$4 sm:$0xff]   ;;  %v1307_v40 = vld [vmem:[#allocation7 + $0x1b4] ss:$12 sps:$4 sm:$0xff]   ;;  %v1305_v42 = vld [vmem:[#allocation7 + $0x1b0] ss:$12 sps:$4 sm:$0xff]  }
  0x34   :  { %881 = vmatprep.subr.bf16.mxu0 %v1274_v18  ;;  %924 = vmatprep.subr.bf16.mxu1 %v1277_v19  ;;  %v1310_v43 = vld [vmem:[#allocation7 + $0x1c] ss:$12 sps:$4 sm:$0xff]   ;;  %v1308_v45 = vld [vmem:[#allocation7 + $0x18] ss:$12 sps:$4 sm:$0xff]   ;;  %v1314_v49 = vld [vmem:[#allocation7] ss:$12 sps:$4 sm:$0xff]  }
  0x35   :  { %v1313_v44 = vld [vmem:[#allocation7 + $0x19c] ss:$12 sps:$4 sm:$0xff]   ;;  %v1311_v46 = vld [vmem:[#allocation7 + $0x198] ss:$12 sps:$4 sm:$0xff]   ;;  %v1317_v50 = vld [vmem:[#allocation7 + $0x180] ss:$12 sps:$4 sm:$0xff]  }
  0x36   :  { %1108 = vmatmul.mubr.msk.bf16.vlgmr.msra.gmra.mxu0 %vm106_vm2, %v1271_v20  ;;  %1109 = vmatmul.mubr.msk.bf16.vlgmr.msra.gmra.mxu1 %vm106_vm2, %v1271_v20  ;;  %v1316_v47 = vld [vmem:[#allocation7 + $0x4] ss:$12 sps:$4 sm:$0xff]   ;;  %v1322_v51 = vld [vmem:[#allocation7 + $0x16c] ss:$12 sps:$4 sm:$0xff]   ;;  %v1320_v53 = vld [vmem:[#allocation7 + $0x168] ss:$12 sps:$4 sm:$0xff]  }
  0x37   :  { %882 = vmatpush1.bf16.msra.mxu0 %v1272_v21  ;;  %925 = vmatpush1.bf16.msra.mxu1 %v1275_v22  ;;  %v1319_v48 = vld [vmem:[#allocation7 + $0x184] ss:$12 sps:$4 sm:$0xff]   ;;  %v1325_v52 = vld [vmem:[#allocation7 + $0x2ec] ss:$12 sps:$4 sm:$0xff]   ;;  %v1323_v54 = vld [vmem:[#allocation7 + $0x2e8] ss:$12 sps:$4 sm:$0xff]   ;;  %v212_v21 = vlaneseq }
  0x38   :  { %883 = vmatprep.subr.bf16.mxu0 %v1280_v23  ;;  %926 = vmatprep.subr.bf16.mxu1 %v1283_v24  ;;  %v1328_v55 = vld [vmem:[#allocation7 + $0x154] ss:$12 sps:$4 sm:$0xff]   ;;  %v1326_v57 = vld [vmem:[#allocation7 + $0x150] ss:$12 sps:$4 sm:$0xff]   ;;  %v1332_v61 = vld [vmem:[#allocation7 + $0x138] ss:$12 sps:$4 sm:$0xff]  }
  0x39   :  { %v1331_v56 = vld [vmem:[#allocation7 + $0x2d4] ss:$12 sps:$4 sm:$0xff]   ;;  %v1329_v58 = vld [vmem:[#allocation7 + $0x2d0] ss:$12 sps:$4 sm:$0xff]   ;;  %v1335_v62 = vld [vmem:[#allocation7 + $0x2b8] ss:$12 sps:$4 sm:$0xff]  }
  0x3a   :  { %v1334_v59 = vld [vmem:[#allocation7 + $0x13c] ss:$12 sps:$4 sm:$0xff]   ;;  %v1340_v63 = vld [vmem:[#allocation7 + $0x124] ss:$12 sps:$4 sm:$0xff]   ;;  %v1338_v1 = vld [vmem:[#allocation7 + $0x120] ss:$12 sps:$4 sm:$0xff]  }
  0x3b   :  { %884 = vmatpush1.bf16.msra.mxu0 %v1278_v25  ;;  %927 = vmatpush1.bf16.msra.mxu1 %v1281_v26  ;;  %v1337_v60 = vld [vmem:[#allocation7 + $0x2bc] ss:$12 sps:$4 sm:$0xff]   ;;  %v1343_v0 = vld [vmem:[#allocation7 + $0x2a4] ss:$12 sps:$4 sm:$0xff]   ;;  %v1341_v2 = vld [vmem:[#allocation7 + $0x2a0] ss:$12 sps:$4 sm:$0xff]  }
  0x3c   :  { %885 = vmatprep.subr.bf16.mxu0 %v1286_v27  ;;  %928 = vmatprep.subr.bf16.mxu1 %v1289_v28  ;;  %v1346_v3 = vld [vmem:[#allocation7 + $0x10c] ss:$12 sps:$4 sm:$0xff]   ;;  %v1344_v5 = vld [vmem:[#allocation7 + $0x108] ss:$12 sps:$4 sm:$0xff]   ;;  %v1350_v8 = vld [vmem:[#allocation7 + $0xf0] ss:$12 sps:$4 sm:$0xff]  }
  0x3d   :  { %v1349_v4 = vld [vmem:[#allocation7 + $0x28c] ss:$12 sps:$4 sm:$0xff]   ;;  %v1347_v6 = vld [vmem:[#allocation7 + $0x288] ss:$12 sps:$4 sm:$0xff]   ;;  %v1353_v10 = vld [vmem:[#allocation7 + $0x270] ss:$12 sps:$4 sm:$0xff]  }
  0x3e   :  { %v1352_v7 = vld [vmem:[#allocation7 + $0xf4] ss:$12 sps:$4 sm:$0xff]   ;;  %v1358_v11 = vld [vmem:[#allocation7 + $0xdc] ss:$12 sps:$4 sm:$0xff]   ;;  %v1356_v12 = vld [vmem:[#allocation7 + $0xd8] ss:$12 sps:$4 sm:$0xff]  }
  0x3f   :  { %886 = vmatpush1.bf16.msra.mxu0 %v1284_v29  ;;  %929 = vmatpush1.bf16.msra.mxu1 %v1287_v30  ;;  %v1355_v9 = vld [vmem:[#allocation7 + $0x274] ss:$12 sps:$4 sm:$0xff]   ;;  %v1361_v13 = vld [vmem:[#allocation7 + $0x25c] ss:$12 sps:$4 sm:$0xff]   ;;  %v1359_v14 = vld [vmem:[#allocation7 + $0x258] ss:$12 sps:$4 sm:$0xff]  }
  0x40   :  { %887 = vmatprep.subr.bf16.mxu0 %v1292_v31  ;;  %930 = vmatprep.subr.bf16.mxu1 %v1295_v32  ;;  %v1364_v15 = vld [vmem:[#allocation7 + $0xc4] ss:$12 sps:$4 sm:$0xff]   ;;  %v1362_v16 = vld [vmem:[#allocation7 + $0xc0] ss:$12 sps:$4 sm:$0xff]   ;;  %v213_v22 = vand.u32 127, %v212_v21 }
  0x41   :  { %v1367_v17 = vld [vmem:[#allocation7 + $0x244] ss:$12 sps:$4 sm:$0xff]   ;;  %v1365_v18 = vld [vmem:[#allocation7 + $0x240] ss:$12 sps:$4 sm:$0xff]  }
  0x42   :  { %v1368_v19 = vld [vmem:[#allocation7 + $0x170] ss:$12 sps:$4 sm:$0xff]   ;;  %v216_v27 = vadd.s32 384, %v213_v22 }
  0x43   :  { %888 = vmatpush1.bf16.msra.mxu0 %v1290_v33  ;;  %931 = vmatpush1.bf16.msra.mxu1 %v1293_v34  ;;  %v1370_v20 = vld [vmem:[#allocation7 + $0x2f0] ss:$12 sps:$4 sm:$0xff]  }
  0x44   :  { %889 = vmatprep.subr.bf16.mxu0 %v1298_v35  ;;  %932 = vmatprep.subr.bf16.mxu1 %v1301_v36  ;;  %vm220_vm3 = vcmp.lt.s32.totalorder %v216_v27, 400  ;;  %v1055_v27 = vld [vmem:[%s1539_s3] sm:$0x7] }
  0x47   :  { %890 = vmatpush1.bf16.msra.mxu0 %v1296_v37  ;;  %933 = vmatpush1.bf16.msra.mxu1 %v1299_v38 }
  0x48   :  { %891 = vmatprep.subr.bf16.mxu0 %v1304_v39  ;;  %934 = vmatprep.subr.bf16.mxu1 %v1307_v40 }
  0x4b   :  { %892 = vmatpush1.bf16.msra.mxu0 %v1302_v41  ;;  %935 = vmatpush1.bf16.msra.mxu1 %v1305_v42 }
  0x4c   :  { %893 = vmatprep.subr.bf16.mxu0 %v1310_v43  ;;  %936 = vmatprep.subr.bf16.mxu1 %v1313_v44  ;;  %v1369_v43 = vld [vmem:[#allocation7 + $0xb0] ss:$12 sps:$4 sm:$0xff]  }
  0x4f   :  { %894 = vmatpush1.bf16.msra.mxu0 %v1308_v45  ;;  %937 = vmatpush1.bf16.msra.mxu1 %v1311_v46  ;;  %v1371_v46 = vld [vmem:[#allocation7 + $0x230] ss:$12 sps:$4 sm:$0xff]  }
  0x50   :  { %895 = vmatprep.subr.bf16.mxu0 %v1316_v47  ;;  %938 = vmatprep.subr.bf16.mxu1 %v1319_v48  ;;  %v1372_v48 = vld [vmem:[#allocation7 + $0x158] ss:$12 sps:$4 sm:$0xff]  }
  0x53   :  { %896 = vmatpush1.bf16.msra.mxu0 %v1314_v49  ;;  %939 = vmatpush1.bf16.msra.mxu1 %v1317_v50  ;;  %v1374_v49 = vld [vmem:[#allocation7 + $0x2d8] ss:$12 sps:$4 sm:$0xff]  }
  0x54   :  { %897 = vmatprep.subr.bf16.mxu0 %v1322_v51  ;;  %940 = vmatprep.subr.bf16.mxu1 %v1325_v52  ;;  %v1373_v50 = vld [vmem:[#allocation7 + $0x98] ss:$12 sps:$4 sm:$0xff]   ;;  %v1376_v52 = vld [vmem:[#allocation7 + $0x140] ss:$12 sps:$4 sm:$0xff]  }
  0x55   :  { %v1375_v51 = vld [vmem:[#allocation7 + $0x218] ss:$12 sps:$4 sm:$0xff]  }
  0x57   :  { %898 = vmatpush2.bf16.msra.mxu0 %v1320_v53  ;;  %941 = vmatpush2.bf16.msra.mxu1 %v1323_v54  ;;  %v1378_v53 = vld [vmem:[#allocation7 + $0x2c0] ss:$12 sps:$4 sm:$0xff]  }
  0x58   :  { %899 = vmatprep.subr.bf16.mxu0 %v1328_v55  ;;  %942 = vmatprep.subr.bf16.mxu1 %v1331_v56  ;;  %v1377_v54 = vld [vmem:[#allocation7 + $0x80] ss:$12 sps:$4 sm:$0xff]   ;;  %v1380_v56 = vld [vmem:[#allocation7 + $0x128] ss:$12 sps:$4 sm:$0xff]  }
  0x59   :  { %v1379_v55 = vld [vmem:[#allocation7 + $0x200] ss:$12 sps:$4 sm:$0xff]  }
  0x5b   :  { %900 = vmatpush2.bf16.msra.mxu0 %v1326_v57  ;;  %943 = vmatpush2.bf16.msra.mxu1 %v1329_v58  ;;  %v1382_v57 = vld [vmem:[#allocation7 + $0x2a8] ss:$12 sps:$4 sm:$0xff]  }
  0x5c   :  { %901 = vmatprep.subr.bf16.mxu0 %v1334_v59  ;;  %944 = vmatprep.subr.bf16.mxu1 %v1337_v60  ;;  %v1381_v58 = vld [vmem:[#allocation7 + $0x68] ss:$12 sps:$4 sm:$0xff]   ;;  %v1384_v60 = vld [vmem:[#allocation7 + $0x110] ss:$12 sps:$4 sm:$0xff]  }
  0x5d   :  { %v1383_v59 = vld [vmem:[#allocation7 + $0x1e8] ss:$12 sps:$4 sm:$0xff]  }
  0x5f   :  { %902 = vmatpush2.bf16.msra.mxu0 %v1332_v61  ;;  %945 = vmatpush2.bf16.msra.mxu1 %v1335_v62  ;;  %v1386_v61 = vld [vmem:[#allocation7 + $0x290] ss:$12 sps:$4 sm:$0xff]  }
  0x60   :  { %903 = vmatprep.subr.bf16.mxu0 %v1340_v63  ;;  %946 = vmatprep.subr.bf16.mxu1 %v1343_v0  ;;  %v1385_v62 = vld [vmem:[#allocation7 + $0x50] ss:$12 sps:$4 sm:$0xff]   ;;  %v1388_v0 = vld [vmem:[#allocation7 + $0xf8] ss:$12 sps:$4 sm:$0xff]  }
  0x61   :  { %v1387_v63 = vld [vmem:[#allocation7 + $0x1d0] ss:$12 sps:$4 sm:$0xff]  }
  0x63   :  { %904 = vmatpush2.bf16.msra.mxu0 %v1338_v1  ;;  %947 = vmatpush2.bf16.msra.mxu1 %v1341_v2  ;;  %v1390_v1 = vld [vmem:[#allocation7 + $0x278] ss:$12 sps:$4 sm:$0xff]  }
  0x64   :  { %905 = vmatprep.subr.bf16.mxu0 %v1346_v3  ;;  %948 = vmatprep.subr.bf16.mxu1 %v1349_v4  ;;  %v1389_v2 = vld [vmem:[#allocation7 + $0x38] ss:$12 sps:$4 sm:$0xff]   ;;  %v1392_v4 = vld [vmem:[#allocation7 + $0xe0] ss:$12 sps:$4 sm:$0xff]  }
  0x65   :  { %v1391_v3 = vld [vmem:[#allocation7 + $0x1b8] ss:$12 sps:$4 sm:$0xff]  }
  0x67   :  { %906 = vmatpush2.bf16.msra.mxu0 %v1344_v5  ;;  %949 = vmatpush2.bf16.msra.mxu1 %v1347_v6  ;;  %v1394_v5 = vld [vmem:[#allocation7 + $0x260] ss:$12 sps:$4 sm:$0xff]  }
  0x68   :  { %907 = vmatprep.subr.bf16.mxu0 %v1352_v7  ;;  %950 = vmatprep.subr.bf16.mxu1 %v1355_v9  ;;  %v1393_v6 = vld [vmem:[#allocation7 + $0x20] ss:$12 sps:$4 sm:$0xff]   ;;  %v1398_v9 = vld [vmem:[#allocation7 + $0x248] ss:$12 sps:$4 sm:$0xff]  }
  0x69   :  { %v1395_v7 = vld [vmem:[#allocation7 + $0x1a0] ss:$12 sps:$4 sm:$0xff]  }
  0x6b   :  { %908 = vmatpush2.bf16.msra.mxu0 %v1350_v8  ;;  %951 = vmatpush2.bf16.msra.mxu1 %v1353_v10  ;;  %v1396_v8 = vld [vmem:[#allocation7 + $0xc8] ss:$12 sps:$4 sm:$0xff]  }
  0x6c   :  { %909 = vmatprep.subr.bf16.mxu0 %v1358_v11  ;;  %952 = vmatprep.subr.bf16.mxu1 %v1361_v13  ;;  %v1397_v10 = vld [vmem:[#allocation7 + $0x8] ss:$12 sps:$4 sm:$0xff]  }
  0x6d   :  { %v1399_v11 = vld [vmem:[#allocation7 + $0x188] ss:$12 sps:$4 sm:$0xff]  }
  0x6f   :  { %910 = vmatpush2.bf16.msra.mxu0 %v1356_v12  ;;  %953 = vmatpush2.bf16.msra.mxu1 %v1359_v14 }
  0x70   :  { %911 = vmatprep.subr.bf16.mxu0 %v1364_v15  ;;  %954 = vmatprep.subr.bf16.mxu1 %v1367_v17 }
  0x73   :  { %912 = vmatpush2.bf16.msra.mxu0 %v1362_v16  ;;  %955 = vmatpush2.bf16.msra.mxu1 %v1365_v18  ;;  %v1058_v18 = vshrl.u32 %v212_v21, 7 }
  0x74   :  { %1206 = vmatprep.subr.bf16.mxu0 %v1368_v19  ;;  %1228 = vmatprep.subr.bf16.mxu1 %v1370_v20 }
  0x75   :  { %v1063_v20 = vsub.s32 1, %v1058_v18 }
  0xf6   :  { %v160_v23 = vpop.f32.mrf.mxu0  ;;  %v203_v24 = vpop.f32.mrf.mxu1 }
  0xf7   :  { %v221_v38 = vmax.f32 %v160_v23, 0.0  ;;  %v223_v39 = vmax.f32 %v203_v24, 0.0 }
  0xf8   :  { %v162_v25 = vpop.f32.mrf.mxu0  ;;  %v205_v26 = vpop.f32.mrf.mxu1 }
  0xf9   :  { %v224_v30 = vmax.f32 %v205_v26, 0.0  ;;  %v222_v34 = vmax.f32 %v162_v25, 0.0  ;;  %v1059_v25 = vsub.s32 0, %v1058_v18 }
  0xfa   :  { %v164_v28 = vpop.f32.mrf.mxu0  ;;  %v207_v29 = vpop.f32.mrf.mxu1 }
  0xfb   :  { %v225_v31 = vmax.f32 %v164_v28, 0.0  ;;  %v227_v35 = vmax.f32 %v207_v29, 0.0  ;;  %v232_v40 = vsel %vm220_vm3, %v224_v30, %v205_v26  ;;  %v1064_v30 = vrot.slane %v1055_v27, %v1063_v20 }
  0xfc   :  { %v166_v32 = vpop.f32.mrf.mxu0  ;;  %v209_v33 = vpop.f32.mrf.mxu1 }
  0xfd   :  { %v226_v36 = vmax.f32 %v166_v32, 0.0  ;;  %v228_v37 = vmax.f32 %v209_v33, 0.0  ;;  %v1515_v44 = vpack.c.bf16 %v225_v31, %v221_v38  ;;  %v1517_v47 = vpack.c.bf16 %v227_v35, %v223_v39 }
  0xff   :  { %v238_v41 = vpack.c.bf16 %v226_v36, %v222_v34  ;;  %v236_v42 = vsel %vm220_vm3, %v228_v37, %v209_v33  ;;  %v1067_v33 = vsub.s32 2, %v1058_v18  ;;  %v1060_v36 = vrot.slane %v1055_v27, %v1059_v25 }
 0x100   :  { %v240_v45 = vpack.c.bf16 %v236_v42, %v232_v40 }
 0x101   :  { %913 = vmatprep.mubr.bf16.mxu0 %v238_v41 }
 0x102   :  { %914 = vmatmul.mubr.bf16.vlgmr.msra.gmra.mxu0 %v1515_v44  ;;  %956 = vmatprep.mubr.bf16.mxu1 %v240_v45 }
 0x103   :  { %1207 = vmatpush3.bf16.msra.mxu0 %v1369_v43  ;;  %957 = vmatmul.mubr.bf16.vlgmr.msra.gmra.mxu1 %v1517_v47 }
 0x104   :  { %999 = vmatprep.mubr.bf16.mxu0 %v238_v41  ;;  %1229 = vmatpush3.bf16.msra.mxu1 %v1371_v46 }
 0x105   :  { %1040 = vmatprep.mubr.bf16.mxu1 %v240_v45  ;;  %1208 = vmatprep.subr.bf16.mxu0 %v1372_v48  ;;  %v1068_v45 = vrot.slane %v1055_v27, %v1067_v33 }
 0x106   :  { %1230 = vmatprep.subr.bf16.mxu1 %v1374_v49 }
 0x107   :  { %1209 = vmatpush3.bf16.msra.mxu0 %v1373_v50 }
 0x108   :  { %1231 = vmatpush3.bf16.msra.mxu1 %v1375_v51  ;;  %1210 = vmatprep.subr.bf16.mxu0 %v1376_v52 }
 0x109   :  { %1232 = vmatprep.subr.bf16.mxu1 %v1378_v53 }
 0x10b   :  { %1211 = vmatpush3.bf16.msra.mxu0 %v1377_v54 }
 0x10c   :  { %1233 = vmatpush3.bf16.msra.mxu1 %v1379_v55  ;;  %1212 = vmatprep.subr.bf16.mxu0 %v1380_v56 }
 0x10d   :  { %1234 = vmatprep.subr.bf16.mxu1 %v1382_v57 }
 0x10f   :  { %1213 = vmatpush3.bf16.msra.mxu0 %v1381_v58 }
 0x110   :  { %1235 = vmatpush3.bf16.msra.mxu1 %v1383_v59  ;;  %1214 = vmatprep.subr.bf16.mxu0 %v1384_v60 }
 0x111   :  { %1236 = vmatprep.subr.bf16.mxu1 %v1386_v61 }
 0x113   :  { %1215 = vmatpush3.bf16.msra.mxu0 %v1385_v62  ;;  %v1087_v62 = vstv %s1540_s4 }
 0x114   :  { %1237 = vmatpush3.bf16.msra.mxu1 %v1387_v63  ;;  %1216 = vmatprep.subr.bf16.mxu0 %v1388_v0 }
 0x115   :  { %1238 = vmatprep.subr.bf16.mxu1 %v1390_v1 }
 0x117   :  { %1217 = vmatpush3.bf16.msra.mxu0 %v1389_v2 }
 0x118   :  { %1239 = vmatpush3.bf16.msra.mxu1 %v1391_v3  ;;  %1218 = vmatprep.subr.bf16.mxu0 %v1392_v4 }
 0x119   :  { %1240 = vmatprep.subr.bf16.mxu1 %v1394_v5 }
 0x11b   :  { %1219 = vmatpush3.bf16.msra.mxu0 %v1393_v6 }
 0x11c   :  { %1241 = vmatpush3.bf16.msra.mxu1 %v1395_v7  ;;  %1220 = vmatprep.subr.bf16.mxu0 %v1396_v8 }
 0x11d   :  { %1242 = vmatprep.subr.bf16.mxu1 %v1398_v9 }
 0x11f   :  { %1221 = vmatpush3.bf16.msra.mxu0 %v1397_v10 }
 0x120   :  { %1243 = vmatpush3.bf16.msra.mxu1 %v1399_v11 }
 0x122   :  { %1000 = vmatmul.mubr.bf16.vlgmr.msra.gmra.mxu0 %v1515_v44 }
 0x123   :  { %1041 = vmatmul.mubr.bf16.vlgmr.msra.gmra.mxu1 %v1517_v47 }
 0x1c2   :  { %v915_v12 = vpop.f32.mrf.mxu0 }
 0x1c3   :  { %v958_v13 = vpop.f32.mrf.mxu1 }
 0x1c4   :  { %v917_v14 = vpop.f32.mrf.mxu0  ;;  %v959_v24 = vadd.f32 %v958_v13, %v915_v12 }
 0x1c5   :  { %v960_v15 = vpop.f32.mrf.mxu1 }
 0x1c6   :  { %v919_v16 = vpop.f32.mrf.mxu0  ;;  %v961_v19 = vadd.f32 %v960_v15, %v917_v14  ;;  %v1049_v21 = vmax.f32 %v959_v24, 0.0 }
 0x1c7   :  { %v962_v17 = vpop.f32.mrf.mxu1 }
 0x1c8   :  { %v921_v22 = vpop.f32.mrf.mxu0  ;;  %v1050_v29 = vmax.f32 %v961_v19, 0.0  ;;  %v963_v37 = vadd.f32 %v962_v17, %v919_v16  ;;  %v1072_v48 = vmul.f32 %v1060_v36, %v1049_v21 }
 0x1c9   :  { %v964_v23 = vpop.f32.mrf.mxu1 }
 0x1ca   :  { %v965_v31 = vadd.f32 %v964_v23, %v921_v22  ;;  %v1073_v41 = vmul.f32 %v1064_v30, %v1050_v29  ;;  %v1052_v49 = vmax.f32 %v963_v37, 0.0 }
 0x1cc   :  { %v1053_v42 = vmax.f32 %v965_v31, 0.0  ;;  %v1078_v55 = vadd.f32 %v1073_v41, %v1072_v48  ;;  %v1075_v56 = vmul.f32 %v1060_v36, %v1052_v49 }
 0x1ce   :  { %v1076_v52 = vmul.f32 %v1064_v30, %v1053_v42 }
 0x1d0   :  { %v1082_v60 = vadd.f32 %v1076_v52, %v1075_v56 }
 0x1e2   :  { %v1222_v26 = vpop.f32.mrf.mxu0 }
 0x1e3   :  { %v1244_v28 = vpop.f32.mrf.mxu1 }
 0x1e4   :  { %v1223_v32 = vpop.f32.mrf.mxu0 }
 0x1e5   :  { %v1224_v34 = vadd.f32 %v1223_v32, %v1222_v26  ;;  %v1245_v35 = vpop.f32.mrf.mxu1 }
 0x1e6   :  { %v1246_v38 = vadd.f32 %v1245_v35, %v1244_v28  ;;  %v1225_v39 = vpop.f32.mrf.mxu0 }
 0x1e7   :  { %v1247_v40 = vpop.f32.mrf.mxu1 }
 0x1e8   :  { %v1043_v43 = vadd.f32 %v1246_v38, %v1224_v34  ;;  %v1226_v44 = vpop.f32.mrf.mxu0 }
 0x1e9   :  { %v1227_v46 = vadd.f32 %v1226_v44, %v1225_v39  ;;  %v1248_v47 = vpop.f32.mrf.mxu1 }
 0x1ea   :  { %v1051_v50 = vmax.f32 %v1043_v43, 0.0  ;;  %v1249_v51 = vadd.f32 %v1248_v47, %v1247_v40 }
 0x1ec   :  { %v1046_v53 = vadd.f32 %v1249_v51, %v1227_v46  ;;  %v1074_v54 = vmul.f32 %v1068_v45, %v1051_v50 }
 0x1ee   :  { %v1054_v57 = vmax.f32 %v1046_v53, 0.0  ;;  %v1079_v58 = vadd.f32 %v1078_v55, %v1074_v54 }
 0x1f0   :  { %1080 = vadd.xlane.f32.xlu0 %v1079_v58  ;;  %v1077_v59 = vmul.f32 %v1068_v45, %v1054_v57 }
 0x1f2   :  { %v1083_v61 = vadd.f32 %v1082_v60, %v1077_v59 }
 0x1f4   :  { %1084 = vadd.xlane.f32.xlu0 %v1083_v61 }
 0x279   :  { %v1081_v63 = vpop.xlane.xlu0 %1080 }
 0x27a   :  { %v1088_v0 = vadd.f32 %v1087_v62, %v1081_v63 }
 0x27c   :  { %1091 = vst.msk [vmem:[%s1541_s5] sm:$0xff] %vm1090_vm4, %v1088_v0 }
 0x27d   :  { %v1085_v1 = vpop.xlane.xlu0 %1084 }
 0x27e   :  { %v1089_v2 = vadd.f32 %v1087_v62, %v1085_v1 }
 0x280   :  { %1092 = vst.msk [vmem:[%s1541_s5 + $0x8] sm:$0xff] %vm1090_vm4, %v1089_v2 }
 0x281   :  { %1097 = vsyncpa [#allocation4], 1 }
 0x282   :  { %1098 = vsyncpa [#allocation6], 1 }

</bundles_post_ra>
